<compile_context>
chip_gen: v5e
topology: v5e:2x2
jax: 0.10.0
libtpu: 0.0.40
codegen_flags: <defaults>
</compile_context>

<pallas_src>
import functools

import jax
import jax.numpy as jnp
from jax.experimental import pallas as pl
from jax.experimental.pallas import tpu as pltpu


def _round_up(x: int, m: int) -> int:
    return ((x + m - 1) // m) * m


def _linear_kernel(x_ref, w_ref, b_ref, o_ref, acc_ref):
    k = pl.program_id(2)

    @pl.when(k == 0)
    def _init():
        # Fuse the bias add into the accumulator init (zero extra work later).
        acc_ref[...] = jnp.broadcast_to(
            b_ref[...].astype(jnp.float32), acc_ref.shape
        )

    # MXU matmul, accumulate in f32.
    acc_ref[...] += jnp.dot(
        x_ref[...], w_ref[...], preferred_element_type=jnp.float32
    )

    @pl.when(k == pl.num_programs(2) - 1)
    def _finalize():
        o_ref[...] = acc_ref[...].astype(o_ref.dtype)


@functools.partial(jax.jit, static_argnames=("tm", "tn", "tk"))
def mylinear_forward(x, w, b, *, tm=128, tn=256, tk=512):
    """Computes x @ w + b with a tiled Pallas TPU kernel.

    x: (M, K) float32
    w: (K, N) float32
    b: (N,)   float32
    returns: (M, N) float32
    """
    M, K = x.shape
    K2, N = w.shape
    assert K == K2, "inner dims must match"
    assert b.shape == (N,)

    # Clamp tile sizes to the (alignment-padded) problem size.
    tm = min(tm, _round_up(M, 8))     # sublane granularity
    tn = min(tn, _round_up(N, 128))   # lane granularity
    tk = min(tk, _round_up(K, 128))   # lane granularity

    Mp = _round_up(M, tm)
    Np = _round_up(N, tn)
    Kp = _round_up(K, tk)

    # Zero-pad to aligned shapes (zeros contribute nothing to the matmul;
    # padded output columns are sliced away below).
    x_p = x if (Mp == M and Kp == K) else jnp.pad(x, ((0, Mp - M), (0, Kp - K)))
    w_p = w if (Kp == K and Np == N) else jnp.pad(w, ((0, Kp - K), (0, Np - N)))
    b_p = b if Np == N else jnp.pad(b, (0, Np - N))
    b2d = b_p.reshape(1, Np)

    grid = (Mp // tm, Np // tn, Kp // tk)

    cost = pl.CostEstimate(
        flops=2 * Mp * Np * Kp,
        transcendentals=0,
        bytes_accessed=4 * (Mp * Kp + Kp * Np + Np + Mp * Np),
    )

    out_p = pl.pallas_call(
        _linear_kernel,
        out_shape=jax.ShapeDtypeStruct((Mp, Np), x.dtype),
        grid_spec=pltpu.PrefetchScalarGridSpec(
            num_scalar_prefetch=0,
            grid=grid,
            in_specs=[
                pl.BlockSpec((tm, tk), lambda i, j, k: (i, k)),   # X tile
                pl.BlockSpec((tk, tn), lambda i, j, k: (k, j)),   # W tile
                pl.BlockSpec((1, tn), lambda i, j, k: (0, j)),    # bias tile
            ],
            out_specs=pl.BlockSpec((tm, tn), lambda i, j, k: (i, j)),
            scratch_shapes=[pltpu.VMEM((tm, tn), jnp.float32)],
        ),
        compiler_params=pltpu.CompilerParams(
            # M, N independent (megacore-shardable on v7x); K is the reduction.
            dimension_semantics=("parallel", "parallel", "arbitrary"),
            # Safe on all generations: above default scoped limits, below
            # v7x's 64 MiB physical VMEM.
            vmem_limit_bytes=32 * 1024 * 1024,
        ),
        cost_estimate=cost,
    )(x_p, w_p, b2d)

    return out_p[:M, :N]


if __name__ == "__main__":
    num_input = 504
    num_output = 2
    batch = 8

    key = jax.random.PRNGKey(0)
    k_x, k_w = jax.random.split(key)

    # Deterministic parameter init matching the module:
    #   w ~ Normal(0, 0.01), b = zeros
    w = (0.01 * jax.random.normal(k_w, (num_input, num_output))).astype(jnp.float32)
    b = jnp.zeros((num_output,), dtype=jnp.float32)

    x = jax.random.normal(k_x, (batch, num_input), dtype=jnp.float32)

    out = mylinear_forward(x, w, b)
    out = jax.block_until_ready(out)

    # Correctness check against plain-JAX reference.
    ref = x @ w + b
    assert out.shape == (batch, num_output)
    assert jnp.allclose(out, ref, atol=1e-5, rtol=1e-5)

    print("KERNEL_OK")
</pallas_src>

<mosaic_0001>
module attributes {stable_mosaic.version = 11 : i64} {
  func.func @_linear_kernel(%arg0: i32, %arg1: i32, %arg2: i32, %arg3: memref<8x512xf32, #tpu.memory_space<vmem>>, %arg4: memref<512x128xf32, #tpu.memory_space<vmem>>, %arg5: memref<1x128xf32, #tpu.memory_space<vmem>>, %arg6: memref<8x128xf32, #tpu.memory_space<vmem>>, %arg7: memref<8x128xf32, #tpu.memory_space<vmem>>) attributes {dimension_semantics = [#tpu.dimension_semantics<parallel>, #tpu.dimension_semantics<parallel>, #tpu.dimension_semantics<arbitrary>], iteration_bounds = array<i64: 1, 1, 1>, scalar_prefetch = 0 : i64, scratch_operands = 1 : i64, tpu.core_type = #tpu.core_type<tc>, window_params = [{transform_indices = @transform_0, window_bounds = array<i64: 8, 512>}, {transform_indices = @transform_1, window_bounds = array<i64: 512, 128>}, {transform_indices = @transform_2, window_bounds = array<i64: 1, 128>}, {transform_indices = @transform_3, window_bounds = array<i64: 8, 128>}]} {
    %c0_i32 = arith.constant 0 : i32
    %0 = arith.cmpi eq, %arg2, %c0_i32 : i32
    %1 = arith.extui %0 : i1 to i32
    %c0_i32_0 = arith.constant 0 : i32
    %2 = arith.cmpi ne, %1, %c0_i32_0 : i32
    scf.if %2 {
      %c0_10 = arith.constant 0 : index
      %c0_11 = arith.constant 0 : index
      %12 = vector.load %arg5[%c0_10, %c0_11] : memref<1x128xf32, #tpu.memory_space<vmem>>, vector<1x128xf32>
      %13 = vector.shape_cast %12 : vector<1x128xf32> to vector<1x128xf32>
      %14 = vector.broadcast %13 : vector<1x128xf32> to vector<8x128xf32>
      %c0_12 = arith.constant 0 : index
      %c0_13 = arith.constant 0 : index
      %15 = vector.load %arg7[%c0_12, %c0_13] : memref<8x128xf32, #tpu.memory_space<vmem>>, vector<8x128xf32>
      tpu.vector_store %arg7[%c0_12, %c0_13], %14 {strides = array<i32>} : memref<8x128xf32, #tpu.memory_space<vmem>>, vector<8x128xf32>,
    } else {
    }
    %c0 = arith.constant 0 : index
    %c0_1 = arith.constant 0 : index
    %3 = vector.load %arg7[%c0, %c0_1] : memref<8x128xf32, #tpu.memory_space<vmem>>, vector<8x128xf32>
    %c0_2 = arith.constant 0 : index
    %c0_3 = arith.constant 0 : index
    %4 = vector.load %arg3[%c0_2, %c0_3] : memref<8x512xf32, #tpu.memory_space<vmem>>, vector<8x512xf32>
    %c0_4 = arith.constant 0 : index
    %c0_5 = arith.constant 0 : index
    %5 = vector.load %arg4[%c0_4, %c0_5] : memref<512x128xf32, #tpu.memory_space<vmem>>, vector<512x128xf32>
    %cst = arith.constant dense<0.000000e+00> : vector<8x128xf32>
    %6 = tpu.matmul %4, %5, %cst {dimension_numbers = #tpu.dot_dimension_numbers<[1], [0], [0], [1], [0, 0, 1, 1], [], []>} : vector<8x512xf32>, vector<512x128xf32>, vector<8x128xf32> -> vector<8x128xf32>
    %7 = arith.addf %3, %6 : vector<8x128xf32>
    %c0_6 = arith.constant 0 : index
    %c0_7 = arith.constant 0 : index
    %8 = vector.load %arg7[%c0_6, %c0_7] : memref<8x128xf32, #tpu.memory_space<vmem>>, vector<8x128xf32>
    tpu.vector_store %arg7[%c0_6, %c0_7], %7 {strides = array<i32>} : memref<8x128xf32, #tpu.memory_space<vmem>>, vector<8x128xf32>,
    %c0_i32_8 = arith.constant 0 : i32
    %9 = arith.cmpi eq, %arg2, %c0_i32_8 : i32
    %10 = arith.extui %9 : i1 to i32
    %c0_i32_9 = arith.constant 0 : i32
    %11 = arith.cmpi ne, %10, %c0_i32_9 : i32
    scf.if %11 {
      %c0_10 = arith.constant 0 : index
      %c0_11 = arith.constant 0 : index
      %12 = vector.load %arg7[%c0_10, %c0_11] : memref<8x128xf32, #tpu.memory_space<vmem>>, vector<8x128xf32>
      %c0_12 = arith.constant 0 : index
      %c0_13 = arith.constant 0 : index
      %13 = vector.load %arg6[%c0_12, %c0_13] : memref<8x128xf32, #tpu.memory_space<vmem>>, vector<8x128xf32>
      tpu.vector_store %arg6[%c0_12, %c0_13], %12 {strides = array<i32>} : memref<8x128xf32, #tpu.memory_space<vmem>>, vector<8x128xf32>,
    } else {
    }
    return
  }
  func.func @transform_0(%arg0: i32, %arg1: i32, %arg2: i32) -> (i32, i32) {
    %c0_i32 = arith.constant 0 : i32
    return %arg0, %arg2 : i32, i32
  }
  func.func @transform_1(%arg0: i32, %arg1: i32, %arg2: i32) -> (i32, i32) {
    %c0_i32 = arith.constant 0 : i32
    return %arg2, %arg1 : i32, i32
  }
  func.func @transform_2(%arg0: i32, %arg1: i32, %arg2: i32) -> (i32, i32) {
    %c0_i32 = arith.constant 0 : i32
    %c0_i32_0 = arith.constant 0 : i32
    return %c0_i32, %arg1 : i32, i32
  }
  func.func @transform_3(%arg0: i32, %arg1: i32, %arg2: i32) -> (i32, i32) {
    %c0_i32 = arith.constant 0 : i32
    return %arg0, %arg1 : i32, i32
  }
}

</mosaic_0001>

<bundles_post_ra>
// kernel: mylinear_forward.1
= control target key start
LH: loop header
LB: loop body
LE: loop exit
PB: predicated region body
PF: predicated region fallthrough
CT: control target
= control target key end

     0   :  { %s414_s1 = inlined_call_operand.vmem [shape: f32[512,128], index: 1, kind: input, shape index: {}]   ;;  %s415_s0 = inlined_call_operand.vmem [shape: f32[8,512], index: 0, kind: input, shape index: {}]   ;;  %s416_s2 = inlined_call_operand.vmem [shape: f32[1,128], index: 2, kind: input, shape index: {}]   ;;  %s417_s3 = inlined_call_operand.vmem [shape: f32[8,128], index: 3, kind: output, shape index: {}]  }
   0x1   :  { %v75_v0 = vld [vmem:[%s414_s1 + $0x178] sm:$0xff]  ;;  %v74_v1 = vld [vmem:[%s414_s1 + $0x170] sm:$0xff]  ;;  %v73_v5 = vld [vmem:[%s414_s1 + $0x168] sm:$0xff] }
   0x2   :  { %v91_v2 = vld [vmem:[%s414_s1 + $0x1f8] sm:$0xff]  ;;  %132 = vmatpush.msra.mxu2 %v75_v0  ;;  %v90_v6 = vld [vmem:[%s414_s1 + $0x1f0] sm:$0xff]  ;;  %v89_v9 = vld [vmem:[%s414_s1 + $0x1e8] sm:$0xff] }
   0x3   :  { %152 = vmatpush.msra.mxu3 %v91_v2  ;;  %v43_v3 = vld [vmem:[%s414_s1 + $0x78] sm:$0xff]  ;;  %v42_v7 = vld [vmem:[%s414_s1 + $0x70] sm:$0xff]  ;;  %v41_v10 = vld [vmem:[%s414_s1 + $0x68] sm:$0xff] }
   0x4   :  { %v59_v4 = vld [vmem:[%s414_s1 + $0xf8] sm:$0xff]  ;;  %92 = vmatpush.msra.mxu0 %v43_v3  ;;  %v58_v8 = vld [vmem:[%s414_s1 + $0xf0] sm:$0xff]  ;;  %133 = vmatpush.msra.mxu2 %v74_v1  ;;  %v72_v11 = vld [vmem:[%s414_s1 + $0x160] sm:$0xff] }
   0x5   :  { %112 = vmatpush.msra.mxu1 %v59_v4  ;;  %153 = vmatpush.msra.mxu3 %v90_v6  ;;  %v57_v12 = vld [vmem:[%s414_s1 + $0xe8] sm:$0xff]  ;;  %v88_v13 = vld [vmem:[%s414_s1 + $0x1e0] sm:$0xff]  ;;  %v71_v16 = vld [vmem:[%s414_s1 + $0x158] sm:$0xff] }
   0x6   :  { %93 = vmatpush.msra.mxu0 %v42_v7  ;;  %134 = vmatpush.msra.mxu2 %v73_v5  ;;  %v40_v14 = vld [vmem:[%s414_s1 + $0x60] sm:$0xff]  ;;  %v87_v17 = vld [vmem:[%s414_s1 + $0x1d8] sm:$0xff]  ;;  %v70_v20 = vld [vmem:[%s414_s1 + $0x150] sm:$0xff] }
   0x7   :  { %113 = vmatpush.msra.mxu1 %v58_v8  ;;  %154 = vmatpush.msra.mxu3 %v89_v9  ;;  %v56_v15 = vld [vmem:[%s414_s1 + $0xe0] sm:$0xff]  ;;  %v39_v18 = vld [vmem:[%s414_s1 + $0x58] sm:$0xff]  ;;  %v86_v21 = vld [vmem:[%s414_s1 + $0x1d0] sm:$0xff] }
   0x8   :  { %94 = vmatpush.msra.mxu0 %v41_v10  ;;  %135 = vmatpush.msra.mxu2 %v72_v11  ;;  %v55_v19 = vld [vmem:[%s414_s1 + $0xd8] sm:$0xff]  ;;  %v38_v22 = vld [vmem:[%s414_s1 + $0x50] sm:$0xff]  ;;  %v69_v24 = vld [vmem:[%s414_s1 + $0x148] sm:$0xff] }
   0x9   :  { %114 = vmatpush.msra.mxu1 %v57_v12  ;;  %155 = vmatpush.msra.mxu3 %v88_v13  ;;  %v54_v23 = vld [vmem:[%s414_s1 + $0xd0] sm:$0xff]  ;;  %v85_v25 = vld [vmem:[%s414_s1 + $0x1c8] sm:$0xff]  ;;  %v68_v28 = vld [vmem:[%s414_s1 + $0x140] sm:$0xff] }
   0xa   :  { %95 = vmatpush.msra.mxu0 %v40_v14  ;;  %136 = vmatpush.msra.mxu2 %v71_v16  ;;  %v37_v26 = vld [vmem:[%s414_s1 + $0x48] sm:$0xff]  ;;  %v84_v29 = vld [vmem:[%s414_s1 + $0x1c0] sm:$0xff]  ;;  %v67_v32 = vld [vmem:[%s414_s1 + $0x138] sm:$0xff] }
   0xb   :  { %115 = vmatpush.msra.mxu1 %v56_v15  ;;  %156 = vmatpush.msra.mxu3 %v87_v17  ;;  %v53_v27 = vld [vmem:[%s414_s1 + $0xc8] sm:$0xff]  ;;  %v36_v30 = vld [vmem:[%s414_s1 + $0x40] sm:$0xff]  ;;  %v83_v33 = vld [vmem:[%s414_s1 + $0x1b8] sm:$0xff] }
   0xc   :  { %96 = vmatpush.msra.mxu0 %v39_v18  ;;  %137 = vmatpush.msra.mxu2 %v70_v20  ;;  %v52_v31 = vld [vmem:[%s414_s1 + $0xc0] sm:$0xff]  ;;  %v35_v34 = vld [vmem:[%s414_s1 + $0x38] sm:$0xff]  ;;  %v66_v36 = vld [vmem:[%s414_s1 + $0x130] sm:$0xff] }
   0xd   :  { %116 = vmatpush.msra.mxu1 %v55_v19  ;;  %157 = vmatpush.msra.mxu3 %v86_v21  ;;  %v51_v35 = vld [vmem:[%s414_s1 + $0xb8] sm:$0xff]  ;;  %v82_v37 = vld [vmem:[%s414_s1 + $0x1b0] sm:$0xff]  ;;  %v65_v40 = vld [vmem:[%s414_s1 + $0x128] sm:$0xff] }
   0xe   :  { %97 = vmatpush.msra.mxu0 %v38_v22  ;;  %138 = vmatpush.msra.mxu2 %v69_v24  ;;  %v34_v38 = vld [vmem:[%s414_s1 + $0x30] sm:$0xff]  ;;  %v81_v41 = vld [vmem:[%s414_s1 + $0x1a8] sm:$0xff]  ;;  %v64_v44 = vld [vmem:[%s414_s1 + $0x120] sm:$0xff] }
   0xf   :  { %117 = vmatpush.msra.mxu1 %v54_v23  ;;  %158 = vmatpush.msra.mxu3 %v85_v25  ;;  %v50_v39 = vld [vmem:[%s414_s1 + $0xb0] sm:$0xff]  ;;  %v33_v42 = vld [vmem:[%s414_s1 + $0x28] sm:$0xff]  ;;  %v80_v45 = vld [vmem:[%s414_s1 + $0x1a0] sm:$0xff] }
  0x10   :  { %98 = vmatpush.msra.mxu0 %v37_v26  ;;  %139 = vmatpush.msra.mxu2 %v68_v28  ;;  %v49_v43 = vld [vmem:[%s414_s1 + $0xa8] sm:$0xff]  ;;  %v32_v46 = vld [vmem:[%s414_s1 + $0x20] sm:$0xff]  ;;  %v63_v48 = vld [vmem:[%s414_s1 + $0x118] sm:$0xff] }
  0x11   :  { %118 = vmatpush.msra.mxu1 %v53_v27  ;;  %159 = vmatpush.msra.mxu3 %v84_v29  ;;  %v48_v47 = vld [vmem:[%s414_s1 + $0xa0] sm:$0xff]  ;;  %v79_v49 = vld [vmem:[%s414_s1 + $0x198] sm:$0xff]  ;;  %v62_v52 = vld [vmem:[%s414_s1 + $0x110] sm:$0xff] }
  0x12   :  { %99 = vmatpush.msra.mxu0 %v36_v30  ;;  %140 = vmatpush.msra.mxu2 %v67_v32  ;;  %v31_v50 = vld [vmem:[%s414_s1 + $0x18] sm:$0xff]  ;;  %v78_v53 = vld [vmem:[%s414_s1 + $0x190] sm:$0xff]  ;;  %v61_v56 = vld [vmem:[%s414_s1 + $0x108] sm:$0xff] }
  0x13   :  { %119 = vmatpush.msra.mxu1 %v52_v31  ;;  %160 = vmatpush.msra.mxu3 %v83_v33  ;;  %v47_v51 = vld [vmem:[%s414_s1 + $0x98] sm:$0xff]  ;;  %v30_v54 = vld [vmem:[%s414_s1 + $0x10] sm:$0xff]  ;;  %v77_v57 = vld [vmem:[%s414_s1 + $0x188] sm:$0xff] }
  0x14   :  { %100 = vmatpush.msra.mxu0 %v35_v34  ;;  %141 = vmatpush.msra.mxu2 %v66_v36  ;;  %v46_v55 = vld [vmem:[%s414_s1 + $0x90] sm:$0xff]  ;;  %v29_v58 = vld [vmem:[%s414_s1 + $0x8] sm:$0xff]  ;;  %v60_v60 = vld [vmem:[%s414_s1 + $0x100] sm:$0xff] }
  0x15   :  { %120 = vmatpush.msra.mxu1 %v51_v35  ;;  %161 = vmatpush.msra.mxu3 %v82_v37  ;;  %v45_v59 = vld [vmem:[%s414_s1 + $0x88] sm:$0xff]  ;;  %v76_v61 = vld [vmem:[%s414_s1 + $0x180] sm:$0xff]  ;;  %v26_v62 = vld [vmem:[%s415_s0 + $0x10] sm:$0xff] }
  0x16   :  { %101 = vmatpush.msra.mxu0 %v34_v38  ;;  %142 = vmatpush.msra.mxu2 %v65_v40  ;;  %v27_v63 = vld [vmem:[%s415_s0 + $0x18] sm:$0xff]  ;;  %v28_v0 = vld [vmem:[%s414_s1] sm:$0xff]  ;;  %v25_v3 = vld [vmem:[%s415_s0 + $0x8] sm:$0xff] }
  0x17   :  { %121 = vmatpush.msra.mxu1 %v50_v39  ;;  %162 = vmatpush.msra.mxu3 %v81_v41  ;;  %v44_v1 = vld [vmem:[%s414_s1 + $0x80] sm:$0xff] }
  0x18   :  { %102 = vmatpush.msra.mxu0 %v33_v42  ;;  %143 = vmatpush.msra.mxu2 %v64_v44  ;;  %v24_v2 = vld [vmem:[%s415_s0] sm:$0xff] }
  0x19   :  { %122 = vmatpush.msra.mxu1 %v49_v43  ;;  %163 = vmatpush.msra.mxu3 %v80_v45  ;;  %v183_v10 = vld [vmem:[%s416_s2] ss:$0 sm:$0xff] }
  0x1a   :  { %103 = vmatpush.msra.mxu0 %v32_v46  ;;  %144 = vmatpush.msra.mxu2 %v63_v48 }
  0x1b   :  { %123 = vmatpush.msra.mxu1 %v48_v47  ;;  %164 = vmatpush.msra.mxu3 %v79_v49 }
  0x1c   :  { %104 = vmatpush.msra.mxu0 %v31_v50  ;;  %145 = vmatpush.msra.mxu2 %v62_v52 }
  0x1d   :  { %124 = vmatpush.msra.mxu1 %v47_v51  ;;  %165 = vmatpush.msra.mxu3 %v78_v53 }
  0x1e   :  { %105 = vmatpush.msra.mxu0 %v30_v54  ;;  %146 = vmatpush.msra.mxu2 %v61_v56 }
  0x1f   :  { %125 = vmatpush.msra.mxu1 %v46_v55  ;;  %166 = vmatpush.msra.mxu3 %v77_v57 }
  0x20   :  { %106 = vmatpush.msra.mxu0 %v29_v58  ;;  %147 = vmatpush.msra.mxu2 %v60_v60 }
  0x21   :  { %126 = vmatpush.msra.mxu1 %v45_v59  ;;  %167 = vmatpush.msra.mxu3 %v76_v61 }
  0x22   :  { %148 = vmatmul.f32.vlgmr.msra.gmra.mxu2 %v26_v62  ;;  %168 = vmatmul.f32.vlgmr.msra.gmra.mxu3 %v27_v63 }
  0x23   :  { %107 = vmatpush.msra.mxu0 %v28_v0  ;;  %127 = vmatpush.msra.mxu1 %v44_v1 }
  0x24   :  { %108 = vmatmul.f32.vlgmr.msra.gmra.mxu0 %v24_v2  ;;  %128 = vmatmul.f32.vlgmr.msra.gmra.mxu1 %v25_v3 }
  0xa1   :  { %v109_v4 = vpop.f32.mrf.mxu0  ;;  %v129_v5 = vpop.f32.mrf.mxu1 }
  0xa2   :  { %v130_v6 = vadd.f32 %v129_v5, %v109_v4 }
  0xa5   :  { %v149_v7 = vpop.f32.mrf.mxu2  ;;  %v169_v8 = vpop.f32.mrf.mxu3 }
  0xa6   :  { %v150_v9 = vadd.f32 %v149_v7, %v130_v6 }
  0xa8   :  { %v170_v11 = vadd.f32 %v169_v8, %v150_v9 }
  0xaa   :  { %v172_v12 = vadd.f32 %v183_v10, %v170_v11 }
  0xac   :  { %178 = vst [vmem:[%s417_s3] sm:$0xff] %v172_v12 }

</bundles_post_ra>
